<compile_context>
chip_gen: v7x
topology: tpu7x:2x2x1
jax: 0.10.0
libtpu: 0.0.40
codegen_flags: <defaults>
</compile_context>

<pallas_src>
import math

import jax
import jax.numpy as jnp
from jax.experimental import pallas as pl
from jax.experimental.pallas import tpu as pltpu

_LANES = 128               # vreg lane width
_SUBLANES = 8              # vreg sublane count (f32)
_MIN_PALLAS_ELEMS = 65536  # below this, plain XLA affine is strictly faster


def _round_up(x, m):
    return ((x + m - 1) // m) * m


def _affine_kernel(wb_ref, x_ref, o_ref):
    # wb_ref: (2,) f32 in SMEM -> [w, b]; x_ref / o_ref: (TM, 128) f32 VMEM tiles.
    w = wb_ref[0]
    b = wb_ref[1]
    o_ref[...] = x_ref[...] * w + b


def linear_regression_v2(x, weight, bias, *, block_rows=4096):
    """x: (N, 1) f32; weight: (1, 1) f32 (nn.Linear weight); bias: (1,) f32."""
    N, F = x.shape
    assert F == 1
    assert block_rows % _SUBLANES == 0

    w = jnp.asarray(weight, jnp.float32).reshape(())
    b = jnp.asarray(bias, jnp.float32).reshape(())

    if N < _MIN_PALLAS_ELEMS:
        # Pure launch overhead at this size; fused XLA affine is already at roofline.
        return (x.astype(jnp.float32) * w + b).reshape(N, 1)

    x_flat = x.reshape(N).astype(jnp.float32)

    rem = N % _LANES
    if rem == 0:
        # Free reshape to a lane-dense slab: no pad, no output slice.
        padded_n = N
        x_slab = x_flat.reshape(N // _LANES, _LANES)
    else:
        # Only the <128-element tail needs padding (ragged rows are handled by
        # Pallas partial blocks below). Costs one extra HBM pass; inputs that are
        # exact multiples of 128 take the zero-copy branch above.
        padded_n = N + (_LANES - rem)
        x_slab = jnp.pad(x_flat, (0, padded_n - N)).reshape(padded_n // _LANES, _LANES)

    rows = padded_n // _LANES
    # Tile: as large as block_rows, but capped near rows/2 so the 1-D "parallel"
    # grid has >=2 balanced tiles. Ragged last block (rows % tm != 0) is masked
    # automatically by Pallas.
    tm = min(block_rows, max(_SUBLANES, _round_up(pl.cdiv(rows, 2), _SUBLANES)))
    grid = (pl.cdiv(rows, tm),)

    wb = jnp.stack([w, b])  # single (2,) scalar array -> one SMEM transfer

    y_slab = pl.pallas_call(
        _affine_kernel,
        out_shape=jax.ShapeDtypeStruct((rows, _LANES), jnp.float32),
        grid=grid,
        in_specs=[
            pl.BlockSpec(memory_space=pltpu.SMEM),          # [w, b] scalars
            pl.BlockSpec((tm, _LANES), lambda i: (i, 0)),   # lane-dense input tile
        ],
        out_specs=pl.BlockSpec((tm, _LANES), lambda i: (i, 0)),
        compiler_params=pltpu.CompilerParams(
            dimension_semantics=("parallel",),  # shard row-tiles across TCs (v7x)
        ),
        cost_estimate=pl.CostEstimate(
            flops=2 * padded_n, transcendentals=0, bytes_accessed=8 * padded_n),
    )(wb, x_slab)

    if rem == 0:
        return y_slab.reshape(N, 1)   # free: same count, same row-major order
    return y_slab.reshape(-1)[:N].reshape(N, 1)


if __name__ == "__main__":
    key = jax.random.PRNGKey(0)
    kx, kw, kb = jax.random.split(key, 3)

    # Deterministic parameters (nn.Linear(1, 1) shapes).
    weight = jax.random.normal(kw, (1, 1), dtype=jnp.float32)  # (out_features, in_features)
    bias = jax.random.normal(kb, (1,), dtype=jnp.float32)      # (out_features,)

    def ref(x):
        return x @ weight.T + bias

    # 1) Tiny case: exercises the XLA fast path (Pallas is pure overhead here).
    x_small = jax.random.normal(kx, (8, 1), dtype=jnp.float32)
    y_small = linear_regression_v2(x_small, weight, bias)
    jax.block_until_ready(y_small)
    assert y_small.shape == (8, 1)
    assert jnp.allclose(y_small, ref(x_small), atol=1e-6, rtol=1e-6)

    # 2) Pallas path, N a multiple of 128: zero-copy slab view (rows=1024, tm=512,
    #    grid=(2,), both blocks full).
    n_aligned = 131_072
    x_aligned = jax.random.normal(kx, (n_aligned, 1), dtype=jnp.float32)
    y_aligned = linear_regression_v2(x_aligned, weight, bias)
    jax.block_until_ready(y_aligned)
    assert y_aligned.shape == (n_aligned, 1)
    assert jnp.allclose(y_aligned, ref(x_aligned), atol=1e-6, rtol=1e-6)

    # 3) Pallas path, ragged N: tail-only pad + ragged last row-block
    #    (rows=547, tm=280, grid=(2,), last block partial -> masked writes).
    n_ragged = 70_001
    x_ragged = jax.random.normal(kx, (n_ragged, 1), dtype=jnp.float32)
    y_ragged = linear_regression_v2(x_ragged, weight, bias)
    jax.block_until_ready(y_ragged)
    assert y_ragged.shape == (n_ragged, 1)
    assert jnp.allclose(y_ragged, ref(x_ragged), atol=1e-6, rtol=1e-6)

    print("KERNEL_OK")
</pallas_src>

<mosaic_0001>
module attributes {stable_mosaic.version = 11 : i64} {
  func.func @_affine_kernel(%arg0: i32, %arg1: memref<2xf32, #tpu.memory_space<smem>>, %arg2: memref<512x128xf32, #tpu.memory_space<vmem>>, %arg3: memref<512x128xf32, #tpu.memory_space<vmem>>) attributes {dimension_semantics = [#tpu.dimension_semantics<parallel>], iteration_bounds = array<i64: 2>, scalar_prefetch = 0 : i64, scratch_operands = 0 : i64, tpu.core_type = #tpu.core_type<tc>, window_params = [{transform_indices = @transform_0, window_bounds = array<i64: 2>}, {transform_indices = @transform_1, window_bounds = array<i64: 512, 128>}, {transform_indices = @transform_2, window_bounds = array<i64: 512, 128>}]} {
    %c0 = arith.constant 0 : index
    %0 = memref.load %arg1[%c0] : memref<2xf32, #tpu.memory_space<smem>>
    %c1 = arith.constant 1 : index
    %1 = memref.load %arg1[%c1] : memref<2xf32, #tpu.memory_space<smem>>
    %c0_0 = arith.constant 0 : index
    %c0_1 = arith.constant 0 : index
    %2 = vector.load %arg2[%c0_0, %c0_1] : memref<512x128xf32, #tpu.memory_space<vmem>>, vector<512x128xf32>
    %3 = vector.broadcast %0 : f32 to vector<512x128xf32>
    %4 = arith.mulf %2, %3 : vector<512x128xf32>
    %5 = vector.broadcast %1 : f32 to vector<512x128xf32>
    %6 = arith.addf %4, %5 : vector<512x128xf32>
    %c0_2 = arith.constant 0 : index
    %c0_3 = arith.constant 0 : index
    %7 = vector.load %arg3[%c0_2, %c0_3] : memref<512x128xf32, #tpu.memory_space<vmem>>, vector<512x128xf32>
    tpu.vector_store %arg3[%c0_2, %c0_3], %6 {strides = array<i32>} : memref<512x128xf32, #tpu.memory_space<vmem>>, vector<512x128xf32>,
    return
  }
  func.func @transform_0(%arg0: i32) -> i32 {
    %c0_i32 = arith.constant 0 : i32
    %c0_i32_0 = arith.constant 0 : i32
    return %c0_i32 : i32
  }
  func.func @transform_1(%arg0: i32) -> (i32, i32) {
    %c0_i32 = arith.constant 0 : i32
    %c0_i32_0 = arith.constant 0 : i32
    return %arg0, %c0_i32 : i32, i32
  }
  func.func @transform_2(%arg0: i32) -> (i32, i32) {
    %c0_i32 = arith.constant 0 : i32
    %c0_i32_0 = arith.constant 0 : i32
    return %arg0, %c0_i32 : i32, i32
  }
}

</mosaic_0001>

<bundles_post_ra>
// kernel: tpu_custom_call.1
= control target key start
LH: loop header
LB: loop body
LE: loop exit
PB: predicated region body
PF: predicated region fallthrough
CT: control target
= control target key end

     0   :  { %7 = vsyncpa [#allocation5], 0  ;;  %s1211_s0 = inlined_call_operand.hbm [shape: f32[2], index: 0, kind: input, shape index: {}]   ;;  %s1212_s1 = inlined_call_operand.hbm [shape: f32[1024,128], index: 1, kind: input, shape index: {}]   ;;  %s1213_s2 = inlined_call_operand.hbm [shape: f32[1024,128], index: 2, kind: output, shape index: {}]  }
   0x1   :  { %8 = vsyncpa [#allocation3], 0 }
   0x2   :  { %10 = vsyncpa [#allocation3 + $0x1], 0 }
   0x3   :  { %11 = vsyncpa [#allocation4], 0 }
   0x4   :  { %13 = vsyncpa [#allocation4 + $0x1], 0  ;;  %s752_s9 = smov 0   ;;  %s754_s10 = smov 0  }
   0x5   :  { %s756_s11 = smov 0   ;;  %s758_s12 = smov 0  }
   0x6 LB: > { %s773_s13 = sadd.s32 4294967295, %s728_s12   ;;  %s535_s14 = sadd.s32 4294967294, %s728_s12   ;;  %s728_s12 = sphi %s758_s12, %s1233_s12   ;;  %s724_s11 = sphi %s756_s11, %s1232_s11   ;;  %s720_s10 = sphi %s754_s10, %s1231_s10   ;;  %s716_s9 = sphi %s752_s9, %s1230_s9  }
   0x7   : > { %s777_s15 = sadd.s32 1, %s728_s12   ;;  %s47_s16 = sadd.s32 1, %s724_s11 }
   0x8   : > { %s44_s17 = ssub.s32 %s728_s12, %s777_s15  ;;  %p54_p0 = scmp.ne.s32.totalorder %s724_s11, %s720_s10 }
   0x9   : > { %p45_p1 = scmp.eq.s32.totalorder %s44_s17, 0  ;;  %p55_p2 = scmp.eq.s32.totalorder %s728_s12, 0 }
   0xa   : > { %p60_p3 = scmp.ne.s32.totalorder %s720_s10, %s716_s9  ;;  %p1214_p4 = scmp.eq.s32.totalorder %s773_s13, 0 }
   0xb   : > { %s789_s18 = scalar_select %p45_p1, %s724_s11, %s47_s16  }
   0xc   : > { %p791_p5 = por %p55_p2, %p54_p0  ;;  %p797_p6 = por %p1214_p4, %p60_p3 }
   0xd   : > { %p84_p7 = scmp.eq.s32.totalorder %s773_s13, 1  ;;  %p90_p8 = scmp.eq.s32.totalorder %s535_s14, 1 }
   0xe   : > { %s1218_s20 = scalar_select %p797_p6, 1, 0 }
   0xf   : > { %p536_p9 = scmp.ge.s32.totalorder %s728_s12, 1  ;;  %p97_p10 = scmp.lt.s32.totalorder %s728_s12, 3 }
  0x10   : > { %p804_p11 = por %p84_p7, %p54_p0  ;;  %p808_p12 = por %p90_p8, %p60_p3 }
  0x11   : > { %p812_p13 = pnand %p536_p9, %p97_p10  ;;  %p575_p4 = scmp.lt.s32.totalorder %s728_s12, 2 }
  0x12   : > { %s1219_s21 = scalar_select %p804_p11, 1, 0 }
  0x13   : > { %s1220_s22 = scalar_select %p808_p12, 1, 0 }
  0x14   : > { %p562_p2 = pneg %p812_p13  ;;  %s119_s24 = sand.u32 1, %s724_s11  }
  0x15   : > { %s552_s25 = sshll.u32 %s728_s12, 13  ;;  %p1222_p6 = scmp.eq.s32.totalorder %s773_s13, 0 }
  0x16   : > { %p826_p7 = pnand %p575_p4, %p791_p5  ;;  %s539_s27 = sshll.u32 %s119_s24, 9 }
  0x17   : > { %p563_p0 = pnand %p562_p2, %p1222_p6  ;;  %s615_s30 = scalar_lea.hbm %s1211_s0, 16 }
  0x18   : > { %p616_p3 = scmp.ne.s32.totalorder %s1211_s0, %s615_s30  ;;  %p622_p6 = scmp.lt.u32.totalorder %s615_s30, %s1211_s0 }
  0x19   : > { %p617_p8 = pneg %p563_p0 }
  0x1b   : > { %p618_p9 = pnand %p617_p8, %p616_p3 }
  0x1d   : > { %p619_p10 = pneg %p618_p9 }
  0x1f   : > { %p624_p4 = pnand %p622_p6, %p619_p10 }
  0x21   : > { %627 = shalt.err (!%p624_p4)
}
  0x22   : > { %s730_s7 = smov [#allocation2]   ;;  %s845_s19 = scalar_lea.hbm %s1212_s1, %s552_s25 }
  0x23   : > { %565 = dma.hbm_to_smem (!%p563_p0), %s1211_s0, 16, %s730_s7, [#allocation5]  }
  0x24   : > { %s123_s28 = scalar_lea.vmem [#allocation6], %s539_s27  ;;  %s849_s30 = scalar_lea.sflag [#allocation3], %s119_s24 }
  0x25   : > { %s130_s29 = sshll.u32 %s123_s28, 4  ;;  %s628_s3 = scalar_lea.hbm %s845_s19, 8192  ;;  %s847_s29 = int_to_ptr.vmem [resolvable:$true] %s130_s29 }
  0x26   : > { %p629_p5 = scmp.ne.s32.totalorder %s845_s19, %s628_s3  ;;  %p630_p2 = pneg %p826_p7 }
  0x27   : > { %s633_s5 = scalar_lea.hbm %s1212_s1, 16384  ;;  %p634_p8 = scmp.lt.u32.totalorder %s845_s19, %s1212_s1 }
  0x28   : > { %p631_p0 = pnand %p630_p2, %p629_p5  ;;  %p635_p9 = scmp.lt.u32.totalorder %s633_s5, %s628_s3 }
  0x29   : > { %p637_p6 = scmp.lt.u32.totalorder %s628_s3, %s845_s19 }
  0x2a   : > { %p632_p3 = pneg %p631_p0  ;;  %p636_p10 = por %p635_p9, %p634_p8 }
  0x2c   : > { %p638_p4 = por %p637_p6, %p636_p10 }
  0x2e   : > { %p639_p1 = pnand %p638_p4, %p632_p3 }
  0x30   : > { %642 = shalt.err (!%p639_p1)
}
  0x31   : > { %s643_s24 = scalar_lea.vmem %s847_s29, 8192  ;;  %s731_s27 = smov [#allocation6]  }
  0x32   : > { %p644_p5 = scmp.ne.s32.totalorder %s847_s29, %s643_s24  ;;  %s648_s8 = sshll.u32 %s731_s27, 4  ;;  %s649_s8 = int_to_ptr.vmem [resolvable:$false] %s648_s8 }
  0x33   : > { %s650_s14 = scalar_lea.vmem %s649_s8, 16384  ;;  %p651_p11 = scmp.lt.s32.totalorder %s847_s29, %s649_s8 }
  0x34   : > { %p646_p0 = pnand %p644_p5, %p630_p2  ;;  %p652_p8 = scmp.lt.s32.totalorder %s650_s14, %s643_s24 }
  0x36   : > { %p647_p12 = pneg %p646_p0  ;;  %p653_p9 = por %p652_p8, %p651_p11 }
  0x38   : > { %p654_p10 = pnand %p653_p9, %p647_p12 }
  0x3a   : > { %657 = shalt.err (!%p654_p10)
}
  0x3b   : > { %s732_s16 = smov 128   ;;  %s733_s17 = smov 8  }
  0x3c   : > { %569 = dma.hbm_to_vmem [thread:$0]  (!%p826_p7), %s845_s19, 8192, %s847_s29, %s849_s30, %s732_s16, %s732_s16, %s733_s17  }
  0x3d   : > { %142 = sbr.rel (%p812_p13) target bundleno = 138 (0x8a), region = 28  ;;  %p1224_p1 = scmp.eq.s32.totalorder (!%p812_p13), %s773_s13, 0 }
  0x44   : > { %703 = dma.done.wait (%p1224_p1), [#allocation5], 16   ;;  %p1225_p2 = pmov %p1224_p1 }
  0x45   : > { %s884_s28 = sand.u32 1, %s720_s10   ;;  %p1226_p11 = scmp.ne.s32.totalorder %s1218_s20, 0 }
  0x46   : > { %705 = vsyncadd (%p1225_p2), [#allocation5], 4294967280  ;;  %s544_s3 = sshll.u32 %s884_s28, 9  ;;  %s149_s25 = scalar_lea.sflag [#allocation3], %s884_s28 }
  0x47   : > { %s890_s26 = scalar_lea.vmem [#allocation6], %s544_s3 }
  0x48   : > { %707 = dma.done.wait (%p1226_p11), %s149_s25, 8192  }
  0x49   : > { %709 = vsyncadd (%p1226_p11), %s149_s25, 4294959104 }
  0x4a   : > { %157 = sfence }
  0x4b   : > { %s176_s23 = sld [smem:[#allocation2]]  ;;  %s546_s19 = sld [smem:[#allocation2 + $0x1]]  ;;  %v178_v0 = vld [vmem:[%s890_s26] sm:$0xff]  ;;  %v179_v1 = vld [vmem:[%s890_s26 + $0x8] sm:$0xff]  ;;  %v180_v2 = vld [vmem:[%s890_s26 + $0x10] sm:$0xff] }
  0x4c   : > { %v181_v3 = vld [vmem:[%s890_s26 + $0x18] sm:$0xff]  ;;  %v182_v4 = vld [vmem:[%s890_s26 + $0x20] sm:$0xff]  ;;  %v183_v5 = vld [vmem:[%s890_s26 + $0x28] sm:$0xff]  ;;  %s933_s20 = scalar_lea.vmem [#allocation7], %s544_s3  ;;  %s553_s29 = sshll.u32 %s773_s13, 13 }
  0x4d   : > { %v184_v6 = vld [vmem:[%s890_s26 + $0x30] sm:$0xff]  ;;  %v185_v8 = vld [vmem:[%s890_s26 + $0x38] sm:$0xff]  ;;  %v186_v13 = vld [vmem:[%s890_s26 + $0x40] sm:$0xff]  ;;  %s450_s30 = sshll.u32 %s933_s20, 4  ;;  %s1156_s5 = scalar_lea.hbm %s1213_s2, %s553_s29  ;;  %s1158_s30 = int_to_ptr.vmem [resolvable:$true] %s450_s30 }
  0x4e   : > { %v187_v18 = vld [vmem:[%s890_s26 + $0x48] sm:$0xff]  ;;  %v188_v19 = vld [vmem:[%s890_s26 + $0x50] sm:$0xff]  ;;  %v189_v20 = vld [vmem:[%s890_s26 + $0x58] sm:$0xff]  ;;  %s437_s6 = scalar_lea.sflag [#allocation4], %s884_s28  ;;  %s658_s7 = scalar_lea.vmem %s1158_s30, 8192 }
  0x4f   : > { %v190_v25 = vld [vmem:[%s890_s26 + $0x60] sm:$0xff]  ;;  %v191_v26 = vld [vmem:[%s890_s26 + $0x68] sm:$0xff]  ;;  %v192_v27 = vld [vmem:[%s890_s26 + $0x70] sm:$0xff]  ;;  %p659_p12 = scmp.ne.s32.totalorder %s1158_s30, %s658_s7  ;;  %p1227_p13 = scmp.ne.s32.totalorder %s1219_s21, 0 }
  0x50   : > { %v193_v32 = vld [vmem:[%s890_s26 + $0x78] sm:$0xff]  ;;  %v194_v37 = vld [vmem:[%s890_s26 + $0x80] sm:$0xff]  ;;  %v195_v42 = vld [vmem:[%s890_s26 + $0x88] sm:$0xff]  ;;  %s734_s24 = smov [#allocation7]  }
  0x51   : > { %v903_v7 = vstv %s176_s23  ;;  %v907_v10 = vstv %s546_s19  ;;  %v196_v43 = vld [vmem:[%s890_s26 + $0x90] sm:$0xff]  ;;  %v197_v44 = vld [vmem:[%s890_s26 + $0x98] sm:$0xff]  ;;  %p660_p7 = pnand %p659_p12, %p1227_p13  ;;  %s662_s27 = sshll.u32 %s734_s24, 4  ;;  %s663_s27 = int_to_ptr.vmem [resolvable:$false] %s662_s27 }
  0x52   : > { %v243_v9 = vmul.f32 %v903_v7, %v178_v0  ;;  %v244_v11 = vmul.f32 %v903_v7, %v179_v1  ;;  %v245_v12 = vmul.f32 %v903_v7, %v180_v2  ;;  %v246_v14 = vmul.f32 %v903_v7, %v181_v3  ;;  %v198_v49 = vld [vmem:[%s890_s26 + $0xa0] sm:$0xff]  ;;  %v199_v50 = vld [vmem:[%s890_s26 + $0xa8] sm:$0xff]  ;;  %v200_v51 = vld [vmem:[%s890_s26 + $0xb0] sm:$0xff]  ;;  %s664_s8 = scalar_lea.vmem %s663_s27, 16384  ;;  %p665_p6 = scmp.lt.s32.totalorder %s1158_s30, %s663_s27 }
  0x53   : > { %v247_v15 = vmul.f32 %v903_v7, %v182_v4  ;;  %v248_v16 = vmul.f32 %v903_v7, %v183_v5  ;;  %v249_v17 = vmul.f32 %v903_v7, %v184_v6  ;;  %v250_v24 = vmul.f32 %v903_v7, %v185_v8  ;;  %v201_v56 = vld [vmem:[%s890_s26 + $0xb8] sm:$0xff]  ;;  %v202_v61 = vld [vmem:[%s890_s26 + $0xc0] sm:$0xff]  ;;  %v203_v2 = vld [vmem:[%s890_s26 + $0xc8] sm:$0xff]  ;;  %p661_p3 = pneg %p660_p7  ;;  %p666_p4 = scmp.lt.s32.totalorder %s664_s8, %s658_s7 }
  0x54   : > { %v308_v21 = vadd.f32 %v907_v10, %v243_v9  ;;  %v309_v22 = vadd.f32 %v907_v10, %v244_v11  ;;  %v310_v23 = vadd.f32 %v907_v10, %v245_v12  ;;  %v311_v28 = vadd.f32 %v907_v10, %v246_v14  ;;  %v204_v3 = vld [vmem:[%s890_s26 + $0xd0] sm:$0xff]  ;;  %v205_v4 = vld [vmem:[%s890_s26 + $0xd8] sm:$0xff]  ;;  %v206_v11 = vld [vmem:[%s890_s26 + $0xe0] sm:$0xff] }
  0x55   : > { %v312_v29 = vadd.f32 %v907_v10, %v247_v15  ;;  %v313_v30 = vadd.f32 %v907_v10, %v248_v16  ;;  %v314_v31 = vadd.f32 %v907_v10, %v249_v17  ;;  %v315_v33 = vadd.f32 %v907_v10, %v250_v24  ;;  %v207_v12 = vld [vmem:[%s890_s26 + $0xe8] sm:$0xff]  ;;  %p667_p5 = por %p666_p4, %p665_p6 }
  0x56   : > { %372 = vst [vmem:[%s933_s20] sm:$0xff] %v308_v21  ;;  %373 = vst [vmem:[%s933_s20 + $0x8] sm:$0xff] %v309_v22  ;;  %v251_v34 = vmul.f32 %v903_v7, %v186_v13  ;;  %v252_v35 = vmul.f32 %v903_v7, %v187_v18  ;;  %v253_v36 = vmul.f32 %v903_v7, %v188_v19  ;;  %v208_v13 = vld [vmem:[%s890_s26 + $0xf0] sm:$0xff]  ;;  %v209_v18 = vld [vmem:[%s890_s26 + $0xf8] sm:$0xff] }
  0x57   : > { %374 = vst [vmem:[%s933_s20 + $0x10] sm:$0xff] %v310_v23  ;;  %375 = vst [vmem:[%s933_s20 + $0x18] sm:$0xff] %v311_v28  ;;  %v254_v38 = vmul.f32 %v903_v7, %v189_v20  ;;  %v255_v39 = vmul.f32 %v903_v7, %v190_v25  ;;  %v256_v40 = vmul.f32 %v903_v7, %v191_v26  ;;  %v210_v23 = vld [vmem:[%s890_s26 + $0x100] sm:$0xff]  ;;  %v211_v28 = vld [vmem:[%s890_s26 + $0x108] sm:$0xff]  ;;  %p668_p0 = pnand %p667_p5, %p661_p3 }
  0x58   : > { %376 = vst [vmem:[%s933_s20 + $0x20] sm:$0xff] %v312_v29  ;;  %377 = vst [vmem:[%s933_s20 + $0x28] sm:$0xff] %v313_v30  ;;  %v257_v41 = vmul.f32 %v903_v7, %v192_v27  ;;  %v316_v45 = vadd.f32 %v907_v10, %v251_v34  ;;  %v317_v46 = vadd.f32 %v907_v10, %v252_v35  ;;  %v212_v29 = vld [vmem:[%s890_s26 + $0x110] sm:$0xff]  ;;  %v213_v30 = vld [vmem:[%s890_s26 + $0x118] sm:$0xff] }
  0x59   : > { %378 = vst [vmem:[%s933_s20 + $0x30] sm:$0xff] %v314_v31  ;;  %379 = vst [vmem:[%s933_s20 + $0x38] sm:$0xff] %v315_v33  ;;  %v318_v47 = vadd.f32 %v907_v10, %v253_v36  ;;  %v258_v48 = vmul.f32 %v903_v7, %v193_v32  ;;  %v319_v52 = vadd.f32 %v907_v10, %v254_v38  ;;  %v214_v35 = vld [vmem:[%s890_s26 + $0x120] sm:$0xff]  ;;  %v215_v36 = vld [vmem:[%s890_s26 + $0x128] sm:$0xff] }
  0x5a   : > { %v320_v53 = vadd.f32 %v907_v10, %v255_v39  ;;  %v321_v54 = vadd.f32 %v907_v10, %v256_v40  ;;  %v322_v55 = vadd.f32 %v907_v10, %v257_v41  ;;  %380 = vst [vmem:[%s933_s20 + $0x40] sm:$0xff] %v316_v45  ;;  %381 = vst [vmem:[%s933_s20 + $0x48] sm:$0xff] %v317_v46 }
  0x5b   : > { %382 = vst [vmem:[%s933_s20 + $0x50] sm:$0xff] %v318_v47  ;;  %v323_v57 = vadd.f32 %v907_v10, %v258_v48  ;;  %v259_v58 = vmul.f32 %v903_v7, %v194_v37  ;;  %v260_v59 = vmul.f32 %v903_v7, %v195_v42  ;;  %v261_v60 = vmul.f32 %v903_v7, %v196_v43  ;;  %v216_v37 = vld [vmem:[%s890_s26 + $0x130] sm:$0xff]  ;;  %v217_v42 = vld [vmem:[%s890_s26 + $0x138] sm:$0xff]  ;;  %v218_v47 = vld [vmem:[%s890_s26 + $0x140] sm:$0xff] }
  0x5c   : > { %383 = vst [vmem:[%s933_s20 + $0x58] sm:$0xff] %v319_v52  ;;  %384 = vst [vmem:[%s933_s20 + $0x60] sm:$0xff] %v320_v53  ;;  %v262_v62 = vmul.f32 %v903_v7, %v197_v44  ;;  %v263_v63 = vmul.f32 %v903_v7, %v198_v49  ;;  %v264_v0 = vmul.f32 %v903_v7, %v199_v50  ;;  %v219_v52 = vld [vmem:[%s890_s26 + $0x148] sm:$0xff]  ;;  %v220_v53 = vld [vmem:[%s890_s26 + $0x150] sm:$0xff] }
  0x5d   : > { %385 = vst [vmem:[%s933_s20 + $0x68] sm:$0xff] %v321_v54  ;;  %386 = vst [vmem:[%s933_s20 + $0x70] sm:$0xff] %v322_v55  ;;  %v265_v1 = vmul.f32 %v903_v7, %v200_v51  ;;  %v324_v5 = vadd.f32 %v907_v10, %v259_v58  ;;  %v325_v6 = vadd.f32 %v907_v10, %v260_v59  ;;  %v221_v54 = vld [vmem:[%s890_s26 + $0x158] sm:$0xff]  ;;  %v222_v59 = vld [vmem:[%s890_s26 + $0x160] sm:$0xff] }
  0x5e   : > { %387 = vst [vmem:[%s933_s20 + $0x78] sm:$0xff] %v323_v57  ;;  %v326_v8 = vadd.f32 %v907_v10, %v261_v60  ;;  %v266_v9 = vmul.f32 %v903_v7, %v201_v56  ;;  %v327_v14 = vadd.f32 %v907_v10, %v262_v62  ;;  %v328_v15 = vadd.f32 %v907_v10, %v263_v63  ;;  %v223_v60 = vld [vmem:[%s890_s26 + $0x168] sm:$0xff] }
  0x5f   : > { %v329_v16 = vadd.f32 %v907_v10, %v264_v0  ;;  %v330_v17 = vadd.f32 %v907_v10, %v265_v1  ;;  %388 = vst [vmem:[%s933_s20 + $0x80] sm:$0xff] %v324_v5  ;;  %389 = vst [vmem:[%s933_s20 + $0x88] sm:$0xff] %v325_v6  ;;  %v267_v20 = vmul.f32 %v903_v7, %v202_v61  ;;  %v224_v61 = vld [vmem:[%s890_s26 + $0x170] sm:$0xff] }
  0x60   : > { %390 = vst [vmem:[%s933_s20 + $0x90] sm:$0xff] %v326_v8  ;;  %v331_v19 = vadd.f32 %v907_v10, %v266_v9  ;;  %v268_v21 = vmul.f32 %v903_v7, %v203_v2  ;;  %v269_v22 = vmul.f32 %v903_v7, %v204_v3  ;;  %391 = vst [vmem:[%s933_s20 + $0x98] sm:$0xff] %v327_v14  ;;  %v225_v2 = vld [vmem:[%s890_s26 + $0x178] sm:$0xff]  ;;  %v226_v8 = vld [vmem:[%s890_s26 + $0x180] sm:$0xff] }
  0x61   : > { %392 = vst [vmem:[%s933_s20 + $0xa0] sm:$0xff] %v328_v15  ;;  %393 = vst [vmem:[%s933_s20 + $0xa8] sm:$0xff] %v329_v16  ;;  %v270_v24 = vmul.f32 %v903_v7, %v205_v4  ;;  %v271_v25 = vmul.f32 %v903_v7, %v206_v11  ;;  %v272_v26 = vmul.f32 %v903_v7, %v207_v12  ;;  %v227_v14 = vld [vmem:[%s890_s26 + $0x188] sm:$0xff]  ;;  %v228_v15 = vld [vmem:[%s890_s26 + $0x190] sm:$0xff] }
  0x62   : > { %394 = vst [vmem:[%s933_s20 + $0xb0] sm:$0xff] %v330_v17  ;;  %v273_v27 = vmul.f32 %v903_v7, %v208_v13  ;;  %395 = vst [vmem:[%s933_s20 + $0xb8] sm:$0xff] %v331_v19  ;;  %v332_v31 = vadd.f32 %v907_v10, %v267_v20  ;;  %v333_v32 = vadd.f32 %v907_v10, %v268_v21  ;;  %v229_v16 = vld [vmem:[%s890_s26 + $0x198] sm:$0xff]  ;;  %v230_v21 = vld [vmem:[%s890_s26 + $0x1a0] sm:$0xff] }
  0x63   : > { %v334_v33 = vadd.f32 %v907_v10, %v269_v22  ;;  %v274_v34 = vmul.f32 %v903_v7, %v209_v18  ;;  %v335_v38 = vadd.f32 %v907_v10, %v270_v24  ;;  %v336_v39 = vadd.f32 %v907_v10, %v271_v25  ;;  %v231_v22 = vld [vmem:[%s890_s26 + $0x1a8] sm:$0xff] }
  0x64   : > { %v337_v40 = vadd.f32 %v907_v10, %v272_v26  ;;  %v338_v41 = vadd.f32 %v907_v10, %v273_v27  ;;  %396 = vst [vmem:[%s933_s20 + $0xc0] sm:$0xff] %v332_v31  ;;  %397 = vst [vmem:[%s933_s20 + $0xc8] sm:$0xff] %v333_v32  ;;  %v275_v44 = vmul.f32 %v903_v7, %v210_v23  ;;  %v232_v23 = vld [vmem:[%s890_s26 + $0x1b0] sm:$0xff] }
  0x65   : > { %398 = vst [vmem:[%s933_s20 + $0xd0] sm:$0xff] %v334_v33  ;;  %v339_v43 = vadd.f32 %v907_v10, %v274_v34  ;;  %v276_v45 = vmul.f32 %v903_v7, %v211_v28  ;;  %v277_v46 = vmul.f32 %v903_v7, %v212_v29  ;;  %399 = vst [vmem:[%s933_s20 + $0xd8] sm:$0xff] %v335_v38  ;;  %v233_v28 = vld [vmem:[%s890_s26 + $0x1b8] sm:$0xff]  ;;  %v234_v33 = vld [vmem:[%s890_s26 + $0x1c0] sm:$0xff] }
  0x66   : > { %400 = vst [vmem:[%s933_s20 + $0xe0] sm:$0xff] %v336_v39  ;;  %401 = vst [vmem:[%s933_s20 + $0xe8] sm:$0xff] %v337_v40  ;;  %v278_v48 = vmul.f32 %v903_v7, %v213_v30  ;;  %v279_v49 = vmul.f32 %v903_v7, %v214_v35  ;;  %v280_v50 = vmul.f32 %v903_v7, %v215_v36  ;;  %v235_v38 = vld [vmem:[%s890_s26 + $0x1c8] sm:$0xff]  ;;  %v236_v39 = vld [vmem:[%s890_s26 + $0x1d0] sm:$0xff] }
  0x67   : > { %402 = vst [vmem:[%s933_s20 + $0xf0] sm:$0xff] %v338_v41  ;;  %v281_v51 = vmul.f32 %v903_v7, %v216_v37  ;;  %403 = vst [vmem:[%s933_s20 + $0xf8] sm:$0xff] %v339_v43  ;;  %v340_v55 = vadd.f32 %v907_v10, %v275_v44  ;;  %v341_v56 = vadd.f32 %v907_v10, %v276_v45  ;;  %v237_v40 = vld [vmem:[%s890_s26 + $0x1d8] sm:$0xff]  ;;  %v238_v45 = vld [vmem:[%s890_s26 + $0x1e0] sm:$0xff] }
  0x68   : > { %v342_v57 = vadd.f32 %v907_v10, %v277_v46  ;;  %v282_v58 = vmul.f32 %v903_v7, %v217_v42  ;;  %v343_v62 = vadd.f32 %v907_v10, %v278_v48  ;;  %v344_v63 = vadd.f32 %v907_v10, %v279_v49  ;;  %v239_v46 = vld [vmem:[%s890_s26 + $0x1e8] sm:$0xff] }
  0x69   : > { %v345_v0 = vadd.f32 %v907_v10, %v280_v50  ;;  %v346_v1 = vadd.f32 %v907_v10, %v281_v51  ;;  %404 = vst [vmem:[%s933_s20 + $0x100] sm:$0xff] %v340_v55  ;;  %405 = vst [vmem:[%s933_s20 + $0x108] sm:$0xff] %v341_v56  ;;  %v283_v4 = vmul.f32 %v903_v7, %v218_v47  ;;  %v240_v47 = vld [vmem:[%s890_s26 + $0x1f0] sm:$0xff] }
  0x6a   : > { %406 = vst [vmem:[%s933_s20 + $0x110] sm:$0xff] %v342_v57  ;;  %v347_v3 = vadd.f32 %v907_v10, %v282_v58  ;;  %v284_v5 = vmul.f32 %v903_v7, %v219_v52  ;;  %v285_v6 = vmul.f32 %v903_v7, %v220_v53  ;;  %407 = vst [vmem:[%s933_s20 + $0x118] sm:$0xff] %v343_v62  ;;  %v241_v52 = vld [vmem:[%s890_s26 + $0x1f8] sm:$0xff] }
  0x6b   : > { %408 = vst [vmem:[%s933_s20 + $0x120] sm:$0xff] %v344_v63  ;;  %409 = vst [vmem:[%s933_s20 + $0x128] sm:$0xff] %v345_v0  ;;  %v286_v9 = vmul.f32 %v903_v7, %v221_v54  ;;  %v287_v11 = vmul.f32 %v903_v7, %v222_v59  ;;  %v288_v12 = vmul.f32 %v903_v7, %v223_v60 }
  0x6c   : > { %410 = vst [vmem:[%s933_s20 + $0x130] sm:$0xff] %v346_v1  ;;  %v289_v13 = vmul.f32 %v903_v7, %v224_v61  ;;  %411 = vst [vmem:[%s933_s20 + $0x138] sm:$0xff] %v347_v3  ;;  %v348_v17 = vadd.f32 %v907_v10, %v283_v4  ;;  %v349_v18 = vadd.f32 %v907_v10, %v284_v5 }
  0x6d   : > { %v350_v19 = vadd.f32 %v907_v10, %v285_v6  ;;  %v290_v20 = vmul.f32 %v903_v7, %v225_v2  ;;  %v351_v24 = vadd.f32 %v907_v10, %v286_v9  ;;  %v352_v25 = vadd.f32 %v907_v10, %v287_v11 }
  0x6e   : > { %v353_v26 = vadd.f32 %v907_v10, %v288_v12  ;;  %v354_v27 = vadd.f32 %v907_v10, %v289_v13  ;;  %412 = vst [vmem:[%s933_s20 + $0x140] sm:$0xff] %v348_v17  ;;  %413 = vst [vmem:[%s933_s20 + $0x148] sm:$0xff] %v349_v18  ;;  %v291_v30 = vmul.f32 %v903_v7, %v226_v8 }
  0x6f   : > { %414 = vst [vmem:[%s933_s20 + $0x150] sm:$0xff] %v350_v19  ;;  %v355_v29 = vadd.f32 %v907_v10, %v290_v20  ;;  %v292_v31 = vmul.f32 %v903_v7, %v227_v14  ;;  %v293_v32 = vmul.f32 %v903_v7, %v228_v15  ;;  %415 = vst [vmem:[%s933_s20 + $0x158] sm:$0xff] %v351_v24 }
  0x70   : > { %416 = vst [vmem:[%s933_s20 + $0x160] sm:$0xff] %v352_v25  ;;  %417 = vst [vmem:[%s933_s20 + $0x168] sm:$0xff] %v353_v26  ;;  %v294_v34 = vmul.f32 %v903_v7, %v229_v16  ;;  %v295_v35 = vmul.f32 %v903_v7, %v230_v21  ;;  %v296_v36 = vmul.f32 %v903_v7, %v231_v22 }
  0x71   : > { %418 = vst [vmem:[%s933_s20 + $0x170] sm:$0xff] %v354_v27  ;;  %v297_v37 = vmul.f32 %v903_v7, %v232_v23  ;;  %419 = vst [vmem:[%s933_s20 + $0x178] sm:$0xff] %v355_v29  ;;  %v356_v41 = vadd.f32 %v907_v10, %v291_v30  ;;  %v357_v42 = vadd.f32 %v907_v10, %v292_v31 }
  0x72   : > { %v358_v43 = vadd.f32 %v907_v10, %v293_v32  ;;  %v298_v44 = vmul.f32 %v903_v7, %v233_v28  ;;  %v359_v48 = vadd.f32 %v907_v10, %v294_v34  ;;  %v360_v49 = vadd.f32 %v907_v10, %v295_v35 }
  0x73   : > { %v361_v50 = vadd.f32 %v907_v10, %v296_v36  ;;  %v362_v51 = vadd.f32 %v907_v10, %v297_v37  ;;  %420 = vst [vmem:[%s933_s20 + $0x180] sm:$0xff] %v356_v41  ;;  %421 = vst [vmem:[%s933_s20 + $0x188] sm:$0xff] %v357_v42  ;;  %v299_v54 = vmul.f32 %v903_v7, %v234_v33 }
  0x74   : > { %422 = vst [vmem:[%s933_s20 + $0x190] sm:$0xff] %v358_v43  ;;  %v363_v53 = vadd.f32 %v907_v10, %v298_v44  ;;  %v300_v55 = vmul.f32 %v903_v7, %v235_v38  ;;  %v301_v56 = vmul.f32 %v903_v7, %v236_v39  ;;  %423 = vst [vmem:[%s933_s20 + $0x198] sm:$0xff] %v359_v48 }
  0x75   : > { %424 = vst [vmem:[%s933_s20 + $0x1a0] sm:$0xff] %v360_v49  ;;  %425 = vst [vmem:[%s933_s20 + $0x1a8] sm:$0xff] %v361_v50  ;;  %v302_v57 = vmul.f32 %v903_v7, %v237_v40  ;;  %v303_v58 = vmul.f32 %v903_v7, %v238_v45  ;;  %v304_v59 = vmul.f32 %v903_v7, %v239_v46 }
  0x76   : > { %426 = vst [vmem:[%s933_s20 + $0x1b0] sm:$0xff] %v362_v51  ;;  %v305_v60 = vmul.f32 %v903_v7, %v240_v47  ;;  %427 = vst [vmem:[%s933_s20 + $0x1b8] sm:$0xff] %v363_v53  ;;  %v364_v61 = vadd.f32 %v907_v10, %v299_v54  ;;  %v365_v62 = vadd.f32 %v907_v10, %v300_v55 }
  0x77   : > { %v366_v63 = vadd.f32 %v907_v10, %v301_v56  ;;  %v306_v0 = vmul.f32 %v903_v7, %v241_v52  ;;  %v367_v1 = vadd.f32 %v907_v10, %v302_v57  ;;  %v368_v2 = vadd.f32 %v907_v10, %v303_v58 }
  0x78   : > { %v369_v3 = vadd.f32 %v907_v10, %v304_v59  ;;  %v370_v4 = vadd.f32 %v907_v10, %v305_v60  ;;  %428 = vst [vmem:[%s933_s20 + $0x1c0] sm:$0xff] %v364_v61  ;;  %429 = vst [vmem:[%s933_s20 + $0x1c8] sm:$0xff] %v365_v62 }
  0x79   : > { %430 = vst [vmem:[%s933_s20 + $0x1d0] sm:$0xff] %v366_v63  ;;  %v371_v7 = vadd.f32 %v907_v10, %v306_v0  ;;  %431 = vst [vmem:[%s933_s20 + $0x1d8] sm:$0xff] %v367_v1 }
  0x7a   : > { %432 = vst [vmem:[%s933_s20 + $0x1e0] sm:$0xff] %v368_v2  ;;  %433 = vst [vmem:[%s933_s20 + $0x1e8] sm:$0xff] %v369_v3 }
  0x7b   : > { %434 = vst [vmem:[%s933_s20 + $0x1f0] sm:$0xff] %v370_v4  ;;  %435 = vst [vmem:[%s933_s20 + $0x1f8] sm:$0xff] %v371_v7 }
  0x7c   : > { %671 = shalt.err (!%p668_p0)
}
  0x7d   : > { %s672_s14 = scalar_lea.hbm %s1156_s5, 8192  ;;  %s676_s3 = scalar_lea.hbm %s1213_s2, 16384 }
  0x7e   : > { %p673_p8 = scmp.ne.s32.totalorder %s1156_s5, %s672_s14  ;;  %p677_p1 = scmp.lt.u32.totalorder %s1156_s5, %s1213_s2 }
  0x7f   : > { %p678_p2 = scmp.lt.u32.totalorder %s676_s3, %s672_s14  ;;  %p680_p12 = scmp.lt.u32.totalorder %s672_s14, %s1156_s5 }
  0x80   : > { %p674_p9 = pnand %p673_p8, %p1227_p13 }
  0x81   : > { %p679_p11 = por %p678_p2, %p677_p1 }
  0x82   : > { %p675_p10 = pneg %p674_p9 }
  0x83   : > { %p681_p7 = por %p680_p12, %p679_p11 }
  0x85   : > { %p682_p3 = pnand %p681_p7, %p675_p10 }
  0x87   : > { %685 = shalt.err (!%p682_p3)
}
  0x88   : > { %s735_s23 = smov 128   ;;  %s736_s19 = smov 8  }
  0x89   : > { %560 = dma.vmem_to_hbm [thread:$0]  (%p1227_p13), %s1158_s30, 8192, %s1156_s5, %s437_s6, %s735_s23, %s735_s23, %s736_s19  }
  0x8a PF: > { %s465_s20 = sand.u32 1, %s716_s9   ;;  %p1228_p6 = scmp.ne.s32.totalorder %s1220_s22, 0 }
  0x8b   : > { %p1229_p4 = scmp.ge.s32.totalorder %s728_s12, 2  ;;  %s466_s29 = scalar_lea.sflag [#allocation4], %s465_s20 }
  0x8d   : > { %p571_p5 = pnand %p1229_p4, %p1228_p6 }
  0x8f   : > { %711 = dma.done.wait (!%p571_p5), %s466_s29, 8192  }
  0x90   : > { %713 = vsyncadd (!%p571_p5), %s466_s29, 4294959104  ;;  %p16_p0 = scmp.ge.s32.totalorder %s777_s15, 4   ;;  %s1230_s9 = smov %s720_s10 }
  0x91   : > { %s1231_s10 = smov %s724_s11  ;;  %s1232_s11 = smov %s789_s18 }
  0x92   : > { %s1233_s12 = smov %s777_s15  ;;  %18 = sbr.rel (!%p16_p0) target bundleno = 6 (0x6), region = 78 }
  0x99   :  { %471 = vsyncpa [#allocation3], 1 }
  0x9a   :  { %473 = vsyncpa [#allocation3 + $0x1], 1 }
  0x9b   :  { %474 = vsyncpa [#allocation4], 1 }
  0x9c   :  { %476 = vsyncpa [#allocation4 + $0x1], 1 }
  0x9d   :  { %477 = vsyncpa [#allocation5], 1 }
  0x9e   :  { %479 = vsyncpa [#allocation5 + $0x1], 1 }

</bundles_post_ra>
